<compile_context>
chip_gen: v5e
topology: v5e:2x2
jax: 0.10.0
libtpu: 0.0.40
codegen_flags: <defaults>
</compile_context>

<pallas_src>
import jax
import jax.numpy as jnp
import numpy as np
from jax.experimental import pallas as pl
from jax.experimental.pallas import tpu as pltpu

TL_MAX = 32768   # max rows (lanes) per grid step
NC = 2           # leading "parallel" grid axis (2 TensorCores on v7x)


def _round_up(x, m):
    return ((x + m - 1) // m) * m


def _ce_kernel(preds_ref, labels_ref, ce_ref, acc_ref):
    """preds_ref : (d, TL)  model dtype — classes on sublanes, rows on lanes
       labels_ref: (1, TL)  int32, -1 == masked/padded row
       ce_ref    : (1, d, 1) f32 output block (per core)
       acc_ref   : (d, TL)  f32 scratch accumulator."""
    i = pl.program_id(1)

    @pl.when(i == 0)
    def _():
        acc_ref[...] = jnp.zeros_like(acc_ref)

    x = preds_ref[...].astype(jnp.float32)            # (d, TL)
    labels = labels_ref[...]                          # (1, TL) int32

    # log-softmax over the class (sublane) axis — cheap XLU reduces
    m = jnp.max(x, axis=0, keepdims=True)             # (1, TL)
    xm = x - m
    e = jnp.exp(xm)                                   # (d, TL)  EUP
    s = jnp.sum(e, axis=0, keepdims=True)             # (1, TL)
    log_s = jnp.log(s)                                # (1, TL)  EUP
    log_p = xm - log_s                                # exact log softmax
    # exact log(1 - p) = log(s - e) - log(s); clamp s - e >= 0 so fp rounding
    # can never feed log() a negative (log(0) -> -inf -> BCE clamp below).
    log_1mp = jnp.log(jnp.maximum(s - e, 0.0)) - log_s

    # same log clamp PyTorch's BCELoss uses (log >= -100)
    log_p = jnp.maximum(log_p, -100.0)
    log_1mp = jnp.maximum(log_1mp, -100.0)

    # reconstruct the one-hot target and the row-valid mask from the labels
    cls = jax.lax.broadcasted_iota(jnp.int32, x.shape, 0)   # (d, TL)
    is_cls = cls == labels                                  # one-hot target
    row_valid = labels >= 0                                 # (1, TL)

    bce = -jnp.where(is_cls, log_p, log_1mp)                # (d, TL)
    acc_ref[...] += jnp.where(row_valid, bce, 0.0)          # pure VPU add

    # epilogue: one cross-lane reduce + one tiny store per core
    @pl.when(i == pl.num_programs(1) - 1)
    def _():
        ce_ref[0] = jnp.sum(acc_ref[...], axis=1, keepdims=True)   # (d, 1)


def _ce_sums_pallas(preds_t, labels_t, d, tl, tpc):
    """preds_t: (d, NC*tpc*tl), labels_t: (1, NC*tpc*tl) i32.
    Returns per-class CE sums of shape (d,)."""
    ce = pl.pallas_call(
        _ce_kernel,
        out_shape=jax.ShapeDtypeStruct((NC, d, 1), jnp.float32),
        grid_spec=pltpu.PrefetchScalarGridSpec(
            num_scalar_prefetch=0,
            grid=(NC, tpc),
            in_specs=[
                pl.BlockSpec((d, tl), lambda c, i: (0, c * tpc + i)),
                pl.BlockSpec((1, tl), lambda c, i: (0, c * tpc + i)),
            ],
            out_specs=pl.BlockSpec((1, d, 1), lambda c, i: (c, 0, 0)),
            scratch_shapes=[pltpu.VMEM((d, tl), jnp.float32)],
        ),
        compiler_params=pltpu.CompilerParams(
            dimension_semantics=("parallel", "arbitrary")),
    )(preds_t, labels_t)

    return jnp.sum(ce[:, :, 0], axis=0)      # (d,)


@jax.jit
def masked_ce_sums(preds, target):
    """Per-class CE sum + masked-sample count, matching CEPerClass.update()."""
    d = preds.shape[-1]
    preds2 = jnp.asarray(preds).reshape(-1, d)         # keep native dtype
    tgt2 = jnp.asarray(target).reshape(-1, d)
    r = preds2.shape[0]

    # labels: class index for valid (one-hot) rows, -1 for all-zero rows.
    # (targets are discrete one-hot in this module, so argmax labels are exact)
    valid = jnp.any(tgt2 != 0.0, axis=-1)
    labels = jnp.where(valid, jnp.argmax(tgt2, axis=-1), -1).astype(jnp.int32)
    cnt = jnp.sum(valid.astype(jnp.float32))            # same count per class

    # adaptive lane tile: big enough to amortize grid overhead, small inputs
    # don't get blown up to TL_MAX.
    tl = min(TL_MAX, _round_up(pl.cdiv(r, NC), 128))
    tpc = pl.cdiv(r, NC * tl)                            # row tiles per core
    rpad = NC * tpc * tl

    # transposed, lane-dense layout: classes on sublanes, rows on lanes.
    # Padded rows carry label -1 and are masked in-kernel.
    preds_t = jnp.pad(preds2.T, ((0, 0), (0, rpad - r)))
    labels_t = jnp.pad(labels[None, :], ((0, 0), (0, rpad - r)),
                       constant_values=-1)

    ce = _ce_sums_pallas(preds_t, labels_t, d, tl, tpc)
    return ce, jnp.broadcast_to(cnt, (d,))


# ----------------------------------------------------------------------------
# Stateful metric wrappers mirroring the torch module structure
# ----------------------------------------------------------------------------
_ATOM_METRIC_NAMES = {'H': 'HydrogenCE', 'C': 'CarbonCE', 'N': 'NitroCE',
                      'O': 'OxyCE', 'F': 'FluorCE', 'B': 'BoronCE',
                      'Br': 'BrCE', 'Cl': 'ClCE', 'I': 'IodineCE',
                      'P': 'PhosphorusCE', 'S': 'SulfurCE', 'Se': 'SeCE',
                      'Si': 'SiCE'}
_BOND_METRIC_NAMES = ['NoBondCE', 'SingleCE', 'DoubleCE', 'TripleCE', 'AromaticCE']


class _CEMetricCollection:
    def __init__(self, names):
        self.names = list(names)
        self.reset()

    def reset(self):
        d = len(self.names)
        self.total_ce = jnp.zeros((d,), jnp.float32)
        self.total_samples = jnp.zeros((d,), jnp.float32)

    def update(self, preds, target):
        ce, cnt = masked_ce_sums(preds, target)
        self.total_ce = self.total_ce + ce
        self.total_samples = self.total_samples + cnt

    def compute(self):
        vals = self.total_ce / self.total_samples
        return {name: vals[i] for i, name in enumerate(self.names)}


class TrainMolecularMetricsDiscrete:
    """JAX/Pallas port of the torch module (no learnable parameters)."""

    def __init__(self, dataset_infos):
        atom_decoder = dataset_infos['atom_decoder']
        self.train_atom_metrics = _CEMetricCollection(
            [_ATOM_METRIC_NAMES[a] for a in atom_decoder])
        self.train_bond_metrics = _CEMetricCollection(_BOND_METRIC_NAMES)

    def __call__(self, masked_pred_X, masked_pred_E, true_X, true_E, log: bool):
        # TODO(synk): atom+bond updates could be fused into one pallas_call via a
        # per-tile group id (scalar prefetch); kept as two tiny back-to-back calls.
        self.train_atom_metrics.update(masked_pred_X, true_X)
        self.train_bond_metrics.update(masked_pred_E, true_E)
        if log:
            to_log = {}
            for k, v in self.train_atom_metrics.compute().items():
                to_log['train/' + k] = float(v)
            for k, v in self.train_bond_metrics.compute().items():
                to_log['train/' + k] = float(v)
            # TODO(synk): wandb logging omitted (no network); values returned instead.
            return to_log
        return None

    def reset(self):
        self.train_atom_metrics.reset()
        self.train_bond_metrics.reset()

    def log_epoch_metrics(self):
        atom = {k: float(v) for k, v in self.train_atom_metrics.compute().items()}
        bond = {k: float(v) for k, v in self.train_bond_metrics.compute().items()}
        return atom, bond


def _ref_per_class_ce(preds, target):
    """NumPy reference of CEPerClass.update()+compute() for all classes."""
    d = preds.shape[-1]
    p2 = np.asarray(preds, np.float64).reshape(-1, d)
    t2 = np.asarray(target, np.float64).reshape(-1, d)
    mask = (t2 != 0.0).any(-1)
    z = p2 - p2.max(-1, keepdims=True)
    sm = np.exp(z) / np.exp(z).sum(-1, keepdims=True)
    out = []
    for c in range(d):
        pr = sm[mask, c]
        tg = t2[mask, c]
        lp = np.maximum(np.log(pr), -100.0)
        l1p = np.maximum(np.log(np.maximum(1.0 - pr, 0.0)), -100.0)
        out.append(-(tg * lp + (1.0 - tg) * l1p).sum() / mask.sum())
    return np.array(out)


if __name__ == "__main__":
    key = jax.random.PRNGKey(0)
    bs, n, dx, de = 2, 8, 5, 5

    k1, k2, k3, k4, k5, k6 = jax.random.split(key, 6)
    masked_pred_X = jax.random.normal(k1, (bs, n, dx), jnp.float32)
    masked_pred_E = jax.random.normal(k2, (bs, n, n, de), jnp.float32)

    # one-hot targets; some rows zeroed out (masked / padded nodes)
    x_labels = jax.random.randint(k3, (bs, n), 0, dx)
    true_X = jax.nn.one_hot(x_labels, dx, dtype=jnp.float32)
    x_keep = (jax.random.uniform(k5, (bs, n, 1)) > 0.25).astype(jnp.float32)
    true_X = true_X * x_keep

    e_labels = jax.random.randint(k4, (bs, n, n), 0, de)
    true_E = jax.nn.one_hot(e_labels, de, dtype=jnp.float32)
    e_keep = (jax.random.uniform(k6, (bs, n, n, 1)) > 0.25).astype(jnp.float32)
    true_E = true_E * e_keep

    dataset_infos = {'atom_decoder': ['H', 'C', 'N', 'O', 'F']}
    metrics = TrainMolecularMetricsDiscrete(dataset_infos)

    logged = metrics(masked_pred_X, masked_pred_E, true_X, true_E, log=True)
    jax.block_until_ready(metrics.train_atom_metrics.total_ce)
    jax.block_until_ready(metrics.train_bond_metrics.total_ce)

    atom_epoch, bond_epoch = metrics.log_epoch_metrics()
    assert all(np.isfinite(np.asarray(list(atom_epoch.values()))))
    assert all(np.isfinite(np.asarray(list(bond_epoch.values()))))

    # correctness check vs. a NumPy reference of the torch semantics
    # (exact log(1-p) path -> tight tolerance)
    atom_ref = _ref_per_class_ce(masked_pred_X, true_X)
    bond_ref = _ref_per_class_ce(masked_pred_E, true_E)
    atom_got = np.asarray(list(atom_epoch.values()))
    bond_got = np.asarray(list(bond_epoch.values()))
    np.testing.assert_allclose(atom_got, atom_ref, rtol=5e-4, atol=1e-5)
    np.testing.assert_allclose(bond_got, bond_ref, rtol=5e-4, atol=1e-5)

    print("KERNEL_OK")
</pallas_src>

<mosaic_0001>
module attributes {stable_mosaic.version = 11 : i64} {
  func.func @_ce_kernel(%arg0: i32, %arg1: i32, %arg2: memref<5x128xf32, #tpu.memory_space<vmem>>, %arg3: memref<1x128xi32, #tpu.memory_space<vmem>>, %arg4: memref<1x5x1xf32, #tpu.memory_space<vmem>>, %arg5: memref<5x128xf32, #tpu.memory_space<vmem>>) attributes {dimension_semantics = [#tpu.dimension_semantics<parallel>, #tpu.dimension_semantics<arbitrary>], iteration_bounds = array<i64: 2, 1>, scalar_prefetch = 0 : i64, scratch_operands = 1 : i64, tpu.core_type = #tpu.core_type<tc>, window_params = [{transform_indices = @transform_0, window_bounds = array<i64: 5, 128>}, {transform_indices = @transform_1, window_bounds = array<i64: 1, 128>}, {transform_indices = @transform_2, window_bounds = array<i64: 1, 5, 1>}]} {
    %c0_i32 = arith.constant 0 : i32
    %0 = arith.cmpi eq, %arg1, %c0_i32 : i32
    %1 = arith.extui %0 : i1 to i32
    %c0_i32_0 = arith.constant 0 : i32
    %2 = arith.cmpi ne, %1, %c0_i32_0 : i32
    scf.if %2 {
      %cst_17 = arith.constant 0.000000e+00 : f32
      %44 = vector.broadcast %cst_17 : f32 to vector<5x128xf32>
      %c0_18 = arith.constant 0 : index
      %c0_19 = arith.constant 0 : index
      %45 = vector.load %arg5[%c0_18, %c0_19] : memref<5x128xf32, #tpu.memory_space<vmem>>, vector<5x128xf32>
      tpu.vector_store %arg5[%c0_18, %c0_19], %44 {strides = array<i32>} : memref<5x128xf32, #tpu.memory_space<vmem>>, vector<5x128xf32>,
    } else {
    }
    %c0 = arith.constant 0 : index
    %c0_1 = arith.constant 0 : index
    %3 = vector.load %arg2[%c0, %c0_1] : memref<5x128xf32, #tpu.memory_space<vmem>>, vector<5x128xf32>
    %c0_2 = arith.constant 0 : index
    %c0_3 = arith.constant 0 : index
    %4 = vector.load %arg3[%c0_2, %c0_3] : memref<1x128xi32, #tpu.memory_space<vmem>>, vector<1x128xi32>
    %cst = arith.constant dense<0xFF800000> : vector<128xf32>
    %5 = vector.multi_reduction <maximumf>, %3, %cst [0] : vector<5x128xf32> to vector<128xf32>
    %6 = vector.shape_cast %5 : vector<128xf32> to vector<1x128xf32>
    %7 = vector.broadcast %6 : vector<1x128xf32> to vector<5x128xf32>
    %8 = arith.subf %3, %7 : vector<5x128xf32>
    %9 = math.exp %8 : vector<5x128xf32>
    %cst_4 = arith.constant dense<0.000000e+00> : vector<128xf32>
    %10 = vector.multi_reduction <add>, %9, %cst_4 [0] : vector<5x128xf32> to vector<128xf32>
    %11 = vector.shape_cast %10 : vector<128xf32> to vector<1x128xf32>
    %12 = math.log %11 : vector<1x128xf32>
    %13 = vector.broadcast %12 : vector<1x128xf32> to vector<5x128xf32>
    %14 = arith.subf %8, %13 : vector<5x128xf32>
    %15 = vector.broadcast %11 : vector<1x128xf32> to vector<5x128xf32>
    %16 = arith.subf %15, %9 : vector<5x128xf32>
    %cst_5 = arith.constant 0.000000e+00 : f32
    %17 = vector.broadcast %cst_5 : f32 to vector<5x128xf32>
    %18 = arith.maximumf %16, %17 : vector<5x128xf32>
    %19 = math.log %18 : vector<5x128xf32>
    %20 = vector.broadcast %12 : vector<1x128xf32> to vector<5x128xf32>
    %21 = arith.subf %19, %20 : vector<5x128xf32>
    %cst_6 = arith.constant -1.000000e+02 : f32
    %22 = vector.broadcast %cst_6 : f32 to vector<5x128xf32>
    %23 = arith.maximumf %14, %22 : vector<5x128xf32>
    %cst_7 = arith.constant -1.000000e+02 : f32
    %24 = vector.broadcast %cst_7 : f32 to vector<5x128xf32>
    %25 = arith.maximumf %21, %24 : vector<5x128xf32>
    %26 = tpu.iota {dimensions = array<i32: 0>} : vector<5x128xi32>
    %27 = vector.broadcast %4 : vector<1x128xi32> to vector<5x128xi32>
    %28 = arith.cmpi eq, %26, %27 : vector<5x128xi32>
    %c0_i32_8 = arith.constant 0 : i32
    %29 = vector.broadcast %c0_i32_8 : i32 to vector<1x128xi32>
    %30 = arith.cmpi sge, %4, %29 : vector<1x128xi32>
    %31 = arith.select %28, %23, %25 : vector<5x128xi1>, vector<5x128xf32>
    %cst_9 = arith.constant 0.000000e+00 : f32
    %32 = vector.broadcast %cst_9 : f32 to vector<5x128xf32>
    %33 = arith.subf %32, %31 : vector<5x128xf32>
    %c0_10 = arith.constant 0 : index
    %c0_11 = arith.constant 0 : index
    %34 = vector.load %arg5[%c0_10, %c0_11] : memref<5x128xf32, #tpu.memory_space<vmem>>, vector<5x128xf32>
    %cst_12 = arith.constant 0.000000e+00 : f32
    %35 = vector.shape_cast %30 : vector<1x128xi1> to vector<1x128xi1>
    %36 = vector.broadcast %35 : vector<1x128xi1> to vector<5x128xi1>
    %37 = vector.broadcast %cst_12 : f32 to vector<5x128xf32>
    %38 = arith.select %36, %33, %37 : vector<5x128xi1>, vector<5x128xf32>
    %39 = arith.addf %34, %38 : vector<5x128xf32>
    %c0_13 = arith.constant 0 : index
    %c0_14 = arith.constant 0 : index
    %40 = vector.load %arg5[%c0_13, %c0_14] : memref<5x128xf32, #tpu.memory_space<vmem>>, vector<5x128xf32>
    tpu.vector_store %arg5[%c0_13, %c0_14], %39 {strides = array<i32>} : memref<5x128xf32, #tpu.memory_space<vmem>>, vector<5x128xf32>,
    %c0_i32_15 = arith.constant 0 : i32
    %41 = arith.cmpi eq, %arg1, %c0_i32_15 : i32
    %42 = arith.extui %41 : i1 to i32
    %c0_i32_16 = arith.constant 0 : i32
    %43 = arith.cmpi ne, %42, %c0_i32_16 : i32
    scf.if %43 {
      %c0_17 = arith.constant 0 : index
      %c0_18 = arith.constant 0 : index
      %44 = vector.load %arg5[%c0_17, %c0_18] : memref<5x128xf32, #tpu.memory_space<vmem>>, vector<5x128xf32>
      %cst_19 = arith.constant dense<0.000000e+00> : vector<5xf32>
      %45 = vector.multi_reduction <add>, %44, %cst_19 [1] : vector<5x128xf32> to vector<5xf32>
      %46 = vector.shape_cast %45 : vector<5xf32> to vector<5x1xf32>
      %c0_20 = arith.constant 0 : index
      %c0_21 = arith.constant 0 : index
      %c0_22 = arith.constant 0 : index
      %47 = vector.load %arg4[%c0_20, %c0_21, %c0_22] : memref<1x5x1xf32, #tpu.memory_space<vmem>>, vector<1x5x1xf32>
      %48 = vector.shape_cast %47 : vector<1x5x1xf32> to vector<5x1xf32>
      %49 = vector.shape_cast %46 : vector<5x1xf32> to vector<1x5x1xf32>
      tpu.vector_store %arg4[%c0_20, %c0_21, %c0_22], %49 {strides = array<i32>} : memref<1x5x1xf32, #tpu.memory_space<vmem>>, vector<1x5x1xf32>,
    } else {
    }
    return
  }
  func.func @transform_0(%arg0: i32, %arg1: i32) -> (i32, i32) {
    %c1_i32 = arith.constant 1 : i32
    %0 = arith.muli %arg0, %c1_i32 : i32
    %1 = arith.addi %0, %arg1 : i32
    %c0_i32 = arith.constant 0 : i32
    %c0_i32_0 = arith.constant 0 : i32
    return %c0_i32, %1 : i32, i32
  }
  func.func @transform_1(%arg0: i32, %arg1: i32) -> (i32, i32) {
    %c1_i32 = arith.constant 1 : i32
    %0 = arith.muli %arg0, %c1_i32 : i32
    %1 = arith.addi %0, %arg1 : i32
    %c0_i32 = arith.constant 0 : i32
    %c0_i32_0 = arith.constant 0 : i32
    return %c0_i32, %1 : i32, i32
  }
  func.func @transform_2(%arg0: i32, %arg1: i32) -> (i32, i32, i32) {
    %c0_i32 = arith.constant 0 : i32
    %c0_i32_0 = arith.constant 0 : i32
    %c0_i32_1 = arith.constant 0 : i32
    return %arg0, %c0_i32, %c0_i32_0 : i32, i32, i32
  }
}

</mosaic_0001>

<bundles_post_ra>
// kernel: masked_ce_sums.1
= control target key start
LH: loop header
LB: loop body
LE: loop exit
PB: predicated region body
PF: predicated region fallthrough
CT: control target
= control target key end

     0   :  { %s390_s9 = smov 0   ;;  %s392_s10 = smov 0   ;;  %s437_s0 = inlined_call_operand.vmem [shape: f32[5,256], index: 0, kind: input, shape index: {}]   ;;  %s438_s1 = inlined_call_operand.vmem [shape: s32[1,256], index: 1, kind: input, shape index: {}]   ;;  %s439_s2 = inlined_call_operand.vmem [shape: f32[2,5,1], index: 2, kind: output, shape index: {}]  }
   0x1   :  { %s394_s11 = smov 0  }
   0x2 LB: > { %s24_s12 = sadd.s32 1, %s367_s10  ;;  %p311_p0 = scmp.ge.s32.totalorder %s371_s11, 1  ;;  %s371_s11 = sphi %s394_s11, %s12_s11   ;;  %s367_s10 = sphi %s392_s10, %s441_s10   ;;  %s363_s9 = sphi %s390_s9, %s440_s9  }
   0x3   : > { %p26_p1 = scmp.ge.s32.totalorder %s24_s12, 2  ;;  %p139_p2 = scmp.lt.s32.totalorder %s371_s11, 3 }
   0x5   : > { %s443_s12 = smov (%p26_p1, %s24_s12), 0  ;;  %p140_p3 = pnand %p311_p0, %p139_p2 }
   0x6   : > { %p165_p4 = scmp.lt.s32.totalorder (!%p140_p3), %s363_s9, 1 }
   0x7   : > { %143 = sbr.rel (%p140_p3) target bundleno = 202 (0xca), region = 28 }
   0xc   : > { %v373_v0 = vmov 0.0   ;;  %s445_s9 = smov (!%p165_p4, %s363_s9), 1  ;;  %vm186_vm0 = vcmask 1044480   ;;  %v214_v23 = vlaneseq  ;;  %v374_v29 = vmov 0  }
   0xd   : > { %183 = vst [vmem:[#allocation2] sm:$0x1f] %v373_v0  ;;  %s312_s13 = sshll.u32 %s445_s9, 3  ;;  %s173_s19 = scalar_lea.vmem %s438_s1, %s445_s9  ;;  %vm235_vm4 = vcmask 4096  }
   0xe   : > { %s168_s16 = scalar_lea.vmem %s437_s0, %s312_s13  ;;  %v185_v21 = vld [vmem:[%s173_s19] sm:$0x1]  ;;  %v215_v27 = vshrl.u32 %v214_v23, 7  ;;  %s178_s22 = scalar_lea.vmem %s439_s2, %s312_s13 }
   0xf   : > { %v184_v1 = vld [vmem:[%s168_s16] sm:$0x1f]  ;;  %vm218_vm1 = vcmp.ge.s32.totalorder %v185_v21, 0 }
  0x10   : > { %v187_v2 = vsel %vm186_vm0, %v184_v1, -inf  ;;  %v342_v28 = vld [vmem:[%s173_s19] ss:$0 sm:$0xff]  ;;  %v222_v30 = vsel %vm218_vm1, 1, %v374_v29 }
  0x11   : > { %v188_v3 = vrot.slane %v187_v2, 4  ;;  %v223_v34 = vperm.slane %v222_v30, 0  ;;  %vm217_vm2 = vcmp.eq.s32.totalorder %v215_v27, %v342_v28 }
  0x13   : > { %v189_v4 = vmax.f32 %v187_v2, %v188_v3  ;;  %vm224_vm3 = vcmp.eq.s32.totalorder %v223_v34, 1 }
  0x14   : > { %v221_v38 = vld [vmem:[#allocation2] sm:$0x1f] }
  0x15   : > { %v190_v5 = vrot.slane %v189_v4, 2 }
  0x17   : > { %v191_v6 = vmax.f32 %v189_v4, %v190_v5 }
  0x19   : > { %v192_v7 = vrot.slane %v191_v6, 1 }
  0x1b   : > { %v193_v8 = vmax.f32 %v191_v6, %v192_v7 }
  0x1d   : > { %v194_v9 = vsub.f32 %v184_v1, %v193_v8 }
  0x1f   : > { %v195_v10 = vmul.f32 1.442695, %v194_v9 }
  0x21   : > { %343 = vpow2.f32 %v195_v10 }
  0x27   : > { %v344_v11 = vpop.eup %343 }
  0x28   : > { %v197_v12 = vsel %vm186_vm0, %v344_v11, 0.0 }
  0x29   : > { %v198_v13 = vrot.slane %v197_v12, 4 }
  0x2b   : > { %v199_v14 = vadd.f32 %v198_v13, %v197_v12 }
  0x2d   : > { %v200_v15 = vrot.slane %v199_v14, 2 }
  0x2f   : > { %v201_v16 = vadd.f32 %v200_v15, %v199_v14 }
  0x31   : > { %v202_v17 = vrot.slane %v201_v16, 1 }
  0x33   : > { %v203_v18 = vadd.f32 %v202_v17, %v201_v16 }
  0x35   : > { %345 = vlog2.f32 %v203_v18  ;;  %v207_v19 = vsub.f32 %v203_v18, %v344_v11 }
  0x37   : > { %v208_v20 = vmax.f32 %v207_v19, 0.0 }
  0x39   : > { %347 = vlog2.f32 %v208_v20 }
  0x3b   : > { %v346_v22 = vpop.eup %345 }
  0x3c   : > { %v205_v24 = vmul.f32 0.6931472, %v346_v22 }
  0x3e   : > { %v206_v25 = vsub.f32 %v194_v9, %v205_v24 }
  0x3f   : > { %v348_v26 = vpop.eup %347 }
  0x40   : > { %v210_v31 = vmul.f32 0.6931472, %v348_v26  ;;  %v212_v33 = vmax.f32 %v206_v25, -100.0 }
  0x42   : > { %v211_v32 = vsub.f32 %v210_v31, %v205_v24 }
  0x44   : > { %v213_v35 = vmax.f32 %v211_v32, -100.0 }
  0x46   : > { %v219_v36 = vsel %vm217_vm2, %v212_v33, %v213_v35 }
  0x47   : > { %v220_v37 = vsub.f32 0.0, %v219_v36 }
  0x49   : > { %v225_v39 = vsel %vm224_vm3, %v220_v37, 0.0 }
  0x4a   : > { %v226_v40 = vadd.f32 %v225_v39, %v221_v38 }
  0x4c   : > { %227 = vst [vmem:[#allocation2] sm:$0x1f] %v226_v40 }
  0x53   : > { %v231_v41 = vld [vmem:[#allocation2] sm:$0x1f] }
  0x54   : > { %v232_v42 = vsel %vm186_vm0, %v231_v41, 0.0 }
  0x55   : > { %233 = vadd.xlane.f32.xlu0 %v232_v42 }
  0xc8   : > { %v234_v43 = vpop.xlane.xlu0 %233 }
  0xc9   : > { %236 = vst.msk [vmem:[%s178_s22] sm:$0x1f] %vm235_vm4, %v234_v43 }
  0xca PF: > { %s12_s11 = sadd.s32 1, %s371_s11   ;;  %s440_s9 = smov %s367_s10 }
  0xcb   : > { %p9_p5 = scmp.ge.s32.totalorder %s12_s11, 4   ;;  %s441_s10 = smov %s443_s12 }
  0xcd   :  { %11 = sbr.rel (!%p9_p5) target bundleno = 2 (0x2), region = 69 }

</bundles_post_ra>
